<compile_context>
chip_gen: v5e
topology: v5e:2x2
jax: 0.10.0
libtpu: 0.0.40
codegen_flags: <defaults>
</compile_context>

<pallas_src>
import functools

import jax
import jax.numpy as jnp
from jax.experimental import pallas as pl
from jax.experimental.pallas import tpu as pltpu


# ----------------------------------------------------------------------------
# Kernel: one GRU-cell step (x = emotion, h = state) with a single MXU matmul.
# ----------------------------------------------------------------------------
def _emote_gru_kernel(xh_ref, w_ref, b_ref, out_ref, *, d_state):
    f32 = jnp.float32
    H = d_state

    xh = xh_ref[...]                               # (B, d_state + d_emotion) f32

    # Single K/N-stacked matmul; lane blocks of g: [ r_pre | z_pre | gi_n | gh_n ]
    g = jnp.dot(xh.astype(jnp.bfloat16), w_ref[...],
                preferred_element_type=f32) + b_ref[...]

    r = jax.nn.sigmoid(g[:, 0 * H:1 * H])
    z = jax.nn.sigmoid(g[:, 1 * H:2 * H])
    n = jnp.tanh(g[:, 2 * H:3 * H] + r * g[:, 3 * H:4 * H])

    h = xh[:, :H]                                  # previous hidden (= state)
    out_ref[...] = ((1.0 - z) * n + z * h).astype(out_ref.dtype)


def _emote_forward(xh, w_all, b_all, d_state):
    batch = xh.shape[0]
    vmem = pl.BlockSpec(memory_space=pltpu.MemorySpace.VMEM)
    return pl.pallas_call(
        functools.partial(_emote_gru_kernel, d_state=d_state),
        out_shape=jax.ShapeDtypeStruct((batch, d_state), jnp.float32),
        in_specs=[vmem, vmem, vmem],
        out_specs=vmem,
    )(xh, w_all, b_all)


@functools.partial(jax.jit, static_argnames=("d_state",))
def _conversationalist_step(state, emotion, w_all, b_all, *, d_state):
    """Jitted one-step forward: tiny concat + a single fused pallas_call."""
    xh = jnp.concatenate([state, emotion], axis=-1)   # (B, d_state + d_emotion)
    return _emote_forward(xh, w_all, b_all, d_state)


# ----------------------------------------------------------------------------
# Parameter construction (synthetic, deterministic; torch GRU gate order r|z|n),
# packed into one bf16 weight slab + one f32 bias slab.
# ----------------------------------------------------------------------------
def _init_emote_slabs(key, d_emotion, d_state):
    H = d_state
    k1, k2, k3, k4 = jax.random.split(key, 4)
    scale = 1.0 / jnp.sqrt(jnp.float32(H))
    w_ih = jax.random.uniform(k1, (d_emotion, 3 * H), jnp.float32, -scale, scale)
    w_hh = jax.random.uniform(k2, (H, 3 * H), jnp.float32, -scale, scale)
    b_ih = jax.random.uniform(k3, (3 * H,), jnp.float32, -scale, scale)
    b_hh = jax.random.uniform(k4, (3 * H,), jnp.float32, -scale, scale)

    wih_r, wih_z, wih_n = w_ih[:, :H], w_ih[:, H:2 * H], w_ih[:, 2 * H:]
    whh_r, whh_z, whh_n = w_hh[:, :H], w_hh[:, H:2 * H], w_hh[:, 2 * H:]

    # rows: [ state rows ; emotion rows ]; lane blocks: [ r | z | gi_n | gh_n ]
    state_rows = jnp.concatenate(
        [whh_r, whh_z, jnp.zeros((H, H), jnp.float32), whh_n], axis=1)
    emotion_rows = jnp.concatenate(
        [wih_r, wih_z, wih_n, jnp.zeros((d_emotion, H), jnp.float32)], axis=1)
    w_all = jnp.concatenate([state_rows, emotion_rows], axis=0).astype(jnp.bfloat16)

    b_all = jnp.concatenate([
        b_ih[:H] + b_hh[:H],               # fused reset bias
        b_ih[H:2 * H] + b_hh[H:2 * H],     # fused update bias
        b_ih[2 * H:],                      # b_in (outside the r-multiply)
        b_hh[2 * H:],                      # b_hn (inside  the r-multiply)
    ])[None, :]                            # (1, 4H) f32
    return w_all, b_all


class Conversationalist:
    """JAX/Pallas port of the PyTorch Conversationalist (forward only)."""

    def __init__(self, d_state, d_context, d_utter, d_emotion, name,
                 context_memory, key):
        self.d_state = d_state
        self.d_context = d_context
        self.d_utter = d_utter
        self.d_emotion = d_emotion
        self.name = name
        self.context_memory = context_memory          # (mem_len, d_context)
        self.context_now = context_memory[-1:]        # SharedMemory.now()

        # emote: nn.GRU(d_emotion, d_state) — the only sub-module whose output
        # reaches forward()'s return value.
        self.emote_w, self.emote_b = _init_emote_slabs(key, d_emotion, d_state)

        self.state = jnp.zeros((1, d_state), jnp.float32)
        self.emotion = jnp.zeros((1, d_emotion), jnp.float32)

    def reset(self):
        self.state = jnp.zeros((1, self.d_state), jnp.float32)
        self.emotion = jnp.zeros((1, self.d_emotion), jnp.float32)

    def forward(self, speaker: str, utter: jnp.ndarray) -> jnp.ndarray:
        # Speaker/listener branch kept only for interface fidelity: per the
        # reference's buggy .copy_() calls, neither path changes state,
        # emotion, or the returned value, so the dead work is not launched.
        del speaker, utter
        return _conversationalist_step(self.state, self.emotion,
                                       self.emote_w, self.emote_b,
                                       d_state=self.d_state)


if __name__ == "__main__":
    key = jax.random.PRNGKey(0)
    k_params, k_ctx, k_utt, k_state, k_emo = jax.random.split(key, 5)

    d_state, d_context, d_utter, d_emotion = 32, 16, 16, 8
    mem_len = 5

    context_memory = jax.random.normal(k_ctx, (mem_len, d_context), jnp.float32)
    utter = jax.random.normal(k_utt, (d_utter,), jnp.float32)

    agent = Conversationalist(d_state, d_context, d_utter, d_emotion,
                              name="justice", context_memory=context_memory,
                              key=k_params)
    # non-trivial internal state / emotion so the GRU cell does real work
    agent.state = jax.random.normal(k_state, (1, d_state), jnp.float32)
    agent.emotion = jax.random.normal(k_emo, (1, d_emotion), jnp.float32)

    out_speak = agent.forward("justice", utter)    # speaker path
    out_listen = agent.forward("advocate", utter)  # listener path (cache hit)
    jax.block_until_ready(out_speak)
    jax.block_until_ready(out_listen)

    assert out_speak.shape == (1, d_state)
    assert out_listen.shape == (1, d_state)
    assert jnp.all(jnp.isfinite(out_speak)) and jnp.all(jnp.isfinite(out_listen))
    print("KERNEL_OK")
</pallas_src>

<mosaic_0001>
module attributes {stable_mosaic.version = 11 : i64} {
  func.func @_emote_gru_kernel(%arg0: memref<1x40xf32, #tpu.memory_space<vmem>>, %arg1: memref<40x128xbf16, #tpu.memory_space<vmem>>, %arg2: memref<1x128xf32, #tpu.memory_space<vmem>>, %arg3: memref<1x32xf32, #tpu.memory_space<vmem>>) attributes {dimension_semantics = [], scalar_prefetch = 0 : i64, scratch_operands = 0 : i64, tpu.core_type = #tpu.core_type<tc>} {
    %c0 = arith.constant 0 : index
    %c0_0 = arith.constant 0 : index
    %0 = vector.load %arg0[%c0, %c0_0] : memref<1x40xf32, #tpu.memory_space<vmem>>, vector<1x40xf32>
    %1 = arith.truncf %0 : vector<1x40xf32> to vector<1x40xbf16>
    %c0_1 = arith.constant 0 : index
    %c0_2 = arith.constant 0 : index
    %2 = vector.load %arg1[%c0_1, %c0_2] : memref<40x128xbf16, #tpu.memory_space<vmem>>, vector<40x128xbf16>
    %cst = arith.constant dense<0.000000e+00> : vector<1x128xf32>
    %3 = tpu.matmul %1, %2, %cst {dimension_numbers = #tpu.dot_dimension_numbers<[1], [0], [0], [1], [0, 0, 1, 1], [], []>} : vector<1x40xbf16>, vector<40x128xbf16>, vector<1x128xf32> -> vector<1x128xf32>
    %c0_3 = arith.constant 0 : index
    %c0_4 = arith.constant 0 : index
    %4 = vector.load %arg2[%c0_3, %c0_4] : memref<1x128xf32, #tpu.memory_space<vmem>>, vector<1x128xf32>
    %5 = arith.addf %3, %4 : vector<1x128xf32>
    %6 = vector.extract_strided_slice %5 {offsets = [0, 0], sizes = [1, 32], strides = [1, 1]} : vector<1x128xf32> to vector<1x32xf32>
    %7 = arith.negf %6 : vector<1x32xf32>
    %8 = math.exp %7 : vector<1x32xf32>
    %cst_5 = arith.constant 1.000000e+00 : f32
    %9 = vector.broadcast %cst_5 : f32 to vector<1x32xf32>
    %10 = arith.addf %9, %8 : vector<1x32xf32>
    %11 = arith.divf %9, %10 : vector<1x32xf32>
    %12 = vector.extract_strided_slice %5 {offsets = [0, 32], sizes = [1, 32], strides = [1, 1]} : vector<1x128xf32> to vector<1x32xf32>
    %13 = arith.negf %12 : vector<1x32xf32>
    %14 = math.exp %13 : vector<1x32xf32>
    %cst_6 = arith.constant 1.000000e+00 : f32
    %15 = vector.broadcast %cst_6 : f32 to vector<1x32xf32>
    %16 = arith.addf %15, %14 : vector<1x32xf32>
    %17 = arith.divf %15, %16 : vector<1x32xf32>
    %18 = vector.extract_strided_slice %5 {offsets = [0, 64], sizes = [1, 32], strides = [1, 1]} : vector<1x128xf32> to vector<1x32xf32>
    %19 = vector.extract_strided_slice %5 {offsets = [0, 96], sizes = [1, 32], strides = [1, 1]} : vector<1x128xf32> to vector<1x32xf32>
    %20 = arith.mulf %11, %19 : vector<1x32xf32>
    %21 = arith.addf %18, %20 : vector<1x32xf32>
    %22 = math.tanh %21 : vector<1x32xf32>
    %23 = vector.extract_strided_slice %0 {offsets = [0, 0], sizes = [1, 32], strides = [1, 1]} : vector<1x40xf32> to vector<1x32xf32>
    %cst_7 = arith.constant 1.000000e+00 : f32
    %24 = vector.broadcast %cst_7 : f32 to vector<1x32xf32>
    %25 = arith.subf %24, %17 : vector<1x32xf32>
    %26 = arith.mulf %25, %22 : vector<1x32xf32>
    %27 = arith.mulf %17, %23 : vector<1x32xf32>
    %28 = arith.addf %26, %27 : vector<1x32xf32>
    %c0_8 = arith.constant 0 : index
    %c0_9 = arith.constant 0 : index
    %29 = vector.load %arg3[%c0_8, %c0_9] : memref<1x32xf32, #tpu.memory_space<vmem>>, vector<1x32xf32>
    tpu.vector_store %arg3[%c0_8, %c0_9], %28 {strides = array<i32>} : memref<1x32xf32, #tpu.memory_space<vmem>>, vector<1x32xf32>,
    return
  }
}

</mosaic_0001>

<bundles_post_ra>
// kernel: _conversationalist_step.1
= control target key start
LH: loop header
LB: loop body
LE: loop exit
PB: predicated region body
PF: predicated region fallthrough
CT: control target
= control target key end

     0   :  { %8 = vsyncpa [#allocation3], 0  ;;  %s265_s0 = inlined_call_operand.vmem [shape: f32[1,40], index: 0, kind: input, shape index: {}]   ;;  %s266_s1 = inlined_call_operand.hbm [shape: bf16[40,128], index: 1, kind: input, shape index: {}]   ;;  %s267_s2 = inlined_call_operand.vmem [shape: f32[1,128], index: 2, kind: input, shape index: {}]   ;;  %s268_s3 = inlined_call_operand.hbm [shape: f32[1,32], index: 3, kind: output, shape index: {}]  }
   0x1   :  { %9 = vsyncpa [#allocation4], 0  ;;  %s16_s14 = sshll.u32 %s266_s1, 4  ;;  %s219_s15 = smov [#allocation2]   ;;  %s17_s14 = int_to_ptr.hbm [resolvable:$true] %s16_s14 }
   0x2   :  { %s18_s16 = sshll.u32 %s219_s15, 4  ;;  %s220_s17 = smov 64   ;;  %s19_s16 = int_to_ptr.vmem [resolvable:$true] %s18_s16 }
   0x3   :  { %s221_s18 = smov 4  }
   0x4   :  { %24 = dma.hbm_to_vmem [thread:$0]  %s17_s14, 320, %s19_s16, [#allocation3], %s220_s17, %s220_s17, %s221_s18  }
   0x5   :  { %215 = dma.done.wait [#allocation3], 320  }
   0x6   :  { %216 = vsyncadd [#allocation3], 4294966976  ;;  %v38_v0 = vld [vmem:[#allocation2 + $0x10] sm:$0xf]  ;;  %vm59_vm0 = vcmask 1043456   ;;  %v153_v4 = vld [vmem:[#allocation2 + $0x8] sm:$0xff] }
   0x7   :  { %v49_v1 = vunpack.c.l.b16 %v38_v0  ;;  %v152_v5 = vld [vmem:[#allocation2] sm:$0xff]  ;;  %vm55_vm1 = vcmask 326656   ;;  %s222_s22 = smov 32   ;;  %s224_s25 = smov [#allocation5]   ;;  %vm123_vm6 = vcmask 253952  }
   0x8   :  { %v32_v6 = vld [vmem:[%s265_s0] sm:$0x1]  ;;  %s130_s26 = sshll.u32 %s224_s25, 4  ;;  %s132_s29 = sshll.u32 %s268_s3, 4  ;;  %s131_s26 = int_to_ptr.vmem [resolvable:$true] %s130_s26  ;;  %s133_s29 = int_to_ptr.hbm [resolvable:$true] %s132_s29 }
   0x9   :  { %v52_v2 = vpack.c.b16 %v49_v1, %v49_v1  ;;  %v33_v7 = vpack.c.bf16 %v32_v6, %v32_v6  ;;  %v39_v8 = vld [vmem:[%s267_s2] sm:$0x1]  ;;  %s223_s2 = smov 96  }
   0xa   :  { %v160_v30 = vld [vmem:[%s265_s0] ss:$0 sm:$0xff] }
   0xb   :  { %v61_v3 = vsel %vm59_vm0, %v52_v2, 0 }
   0xc   :  { %68 = vmatpush.bf16.msra.mxu0 %v61_v3 }
  0x10   :  { %69 = vmatpush.bf16.msra.mxu0 %v153_v4 }
  0x14   :  { %70 = vmatpush.bf16.msra.mxu0 %v152_v5 }
  0x17   :  { %150 = vmatmul.msk.bf16.vlgmr.msra.gmra.mxu0 %vm55_vm1, %v33_v7 }
  0x94   :  { %v72_v9 = vpop.f32.mrf.mxu0 }
  0x95   :  { %v73_v10 = vadd.f32 %v72_v9, %v39_v8 }
  0x97   :  { %96 = vrot.lane.b32.xlu0 %v73_v10, %s222_s22  ;;  %v151_v12 = vmul.f32 -1.442695, %v73_v10 }
  0x99   :  { %161 = vpow2.f32 %v151_v12 }
  0x9c   :  { %v74_v11 = vpop.f32.mrf.mxu0 }
  0x9f   :  { %v162_v13 = vpop.eup %161 }
  0xa0   :  { %v79_v14 = vadd.f32 1.0, %v162_v13 }
  0xa2   :  { %163 = vrcp.f32 %v79_v14  ;;  %v91_v20 = vand.u32 2147483648, %v79_v14  ;;  %vm85_vm3 = vweird.f32 %v79_v14  ;;  %v89_v21 = vand.u32 2147483647, %v79_v14 }
  0xa4   :  { %v92_v23 = vor.u32 1.1754944e-38, %v91_v20  ;;  %vm90_vm5 = vcmp.eq.f32.partialorder %v89_v21, 8.507059e+37 }
  0xa8   :  { %v164_v15 = vpop.eup %163 }
  0xa9   :  { %v81_v16 = vmul.f32 %v164_v15, %v79_v14  ;;  %vm86_vm2 = vweird.f32 %v164_v15 }
  0xaa   :  { %vm87_vm4 = vmor %vm85_vm3, %vm86_vm2 }
  0xab   :  { %v82_v17 = vsub.f32 1.0, %v81_v16 }
  0xad   :  { %v83_v18 = vmul.f32 %v164_v15, %v82_v17 }
  0xaf   :  { %v84_v19 = vadd.f32 %v164_v15, %v83_v18 }
  0xb1   :  { %v88_v22 = vsel %vm87_vm4, %v164_v15, %v84_v19 }
  0xb2   :  { %v93_v25 = vsel %vm90_vm5, %v92_v23, %v88_v22 }
  0xb3   :  { %v106_v32 = vsub.f32 1.0, %v93_v25 }
 0x109   :  { %v97_v24 = vpop.permute.xlu0 %96 }
 0x10a   :  { %v99_v26 = vmul.f32 %v97_v24, %v93_v25 }
 0x10c   :  { %101 = vrot.lane.b32.xlu0 %v99_v26, %s220_s17 }
 0x17e   :  { %v102_v27 = vpop.permute.xlu0 %101 }
 0x17f   :  { %v104_v28 = vadd.f32 %v102_v27, %v73_v10 }
 0x181   :  { %165 = vtanh.f32 %v104_v28 }
 0x187   :  { %v166_v29 = vpop.eup %165 }
 0x188   :  { %108 = vrot.lane.b32.xlu1 %v166_v29, %s223_s2 }
 0x190   :  { %114 = vrot.lane.b32.xlu1 %v160_v30, %s222_s22 }
 0x1fa   :  { %v109_v31 = vpop.permute.xlu1 %108 }
 0x1fb   :  { %v111_v34 = vmul.f32 %v109_v31, %v106_v32 }
 0x202   :  { %v115_v33 = vpop.permute.xlu1 %114 }
 0x203   :  { %v117_v35 = vmul.f32 %v115_v33, %v93_v25 }
 0x205   :  { %v118_v36 = vadd.f32 %v117_v35, %v111_v34 }
 0x207   :  { %120 = vrot.lane.b32.xlu2 %v118_v36, %s223_s2 }
 0x261   :  { %v121_v37 = vpop.permute.xlu2 %120 }
 0x262   :  { %124 = vst.msk [vmem:[#allocation5] sm:$0x1] %vm123_vm6, %v121_v37 }
 0x263   :  { %135 = dma.vmem_to_hbm [thread:$0]  %s131_s26, 16, %s133_s29, [#allocation4]  }
 0x264   :  { %217 = dma.done.wait [#allocation4], 16  }
 0x265   :  { %218 = vsyncadd [#allocation4], 4294967280 }
 0x266   :  { %140 = vsyncpa [#allocation3], 1 }
 0x267   :  { %141 = vsyncpa [#allocation4], 1 }

</bundles_post_ra>
